<compile_context>
chip_gen: v5e
topology: v5e:2x2
jax: 0.10.0
libtpu: 0.0.40
codegen_flags: <defaults>
</compile_context>

<pallas_src>
import functools

import jax
import jax.numpy as jnp
from jax.experimental import pallas as pl
from jax.experimental.pallas import tpu as pltpu


def _dice_stats_kernel(x_ref, lab_ref, tp_ref, sp_ref, sy_ref, *, c, hw, tile):
    """One grid step: a (1, C, T) tile of logits + (1, 1, T) integer labels.

    Accumulates per-channel sums of p*y, p and y over the pixel (lane) axis
    into per-batch (1, C, 1) accumulator blocks.
    """
    @pl.when(pl.program_id(1) == 0)
    def _init():
        tp_ref[...] = jnp.zeros_like(tp_ref)
        sp_ref[...] = jnp.zeros_like(sp_ref)
        sy_ref[...] = jnp.zeros_like(sy_ref)

    x = x_ref[...].astype(jnp.float32)            # (1, C, T) logits
    lab = lab_ref[...]                            # (1, 1, T) int32 labels

    # softmax over the channel (sublane) axis
    m = jnp.max(x, axis=1, keepdims=True)
    e = jnp.exp(x - m)
    s = jnp.sum(e, axis=1, keepdims=True)         # (1, 1, T)
    inv = pl.reciprocal(s, approx=True)           # EUP slot
    inv = inv * (2.0 - s * inv)                   # one Newton step: ~exact
    p = e * inv                                   # (1, C, T)

    # one-hot labels rebuilt in-kernel; padded labels (== c) match no channel
    ch = jax.lax.broadcasted_iota(jnp.int32, (1, c, tile), 1)
    y = (ch == lab).astype(jnp.float32)           # (1, C, T)

    if hw % tile != 0:
        # ragged tail: zero out contributions from padded pixels
        pos = (pl.program_id(1) * tile
               + jax.lax.broadcasted_iota(jnp.int32, (1, 1, tile), 2))
        p = jnp.where(pos < hw, p, 0.0)

    tp_ref[...] += jnp.sum(p * y, axis=2, keepdims=True)
    sp_ref[...] += jnp.sum(p, axis=2, keepdims=True)
    sy_ref[...] += jnp.sum(y, axis=2, keepdims=True)


def _choose_tile_hw(hw, c, itemsize):
    """Pick a lane tile (multiple of 128) giving a ~2 MiB logits block.

    2 MiB double-buffered (~4 MiB) + the label block stays far below the
    scoped-VMEM default on every generation (v7x: 32 MiB of 64 MiB physical).
    """
    target_elems = (2 << 20) // max(1, c * itemsize)
    t = max(128, (min(target_elems, 1 << 15) // 128) * 128)
    hw_ceil = -(-hw // 128) * 128
    return min(t, hw_ceil)


def _dice_stats(x3, labels3, hw):
    """x3: (B, C, HW_pad) logits (native dtype); labels3: (B, 1, HW_pad) int32.

    hw: number of valid pixels per batch element (<= HW_pad).
    Returns per-channel (tp, sum_p, sum_y), each shape (C,), float32.
    """
    b, c, hw_pad = x3.shape
    tile = x3.shape[-1] if hw_pad == 0 else None  # placeholder, set below
    tile = _choose_tile_hw(hw, c, x3.dtype.itemsize)
    assert hw_pad % tile == 0
    n_tiles = hw_pad // tile

    kernel = functools.partial(_dice_stats_kernel, c=c, hw=hw, tile=tile)

    out_shapes = tuple(
        jax.ShapeDtypeStruct((b, c, 1), jnp.float32) for _ in range(3))
    tp_b, sp_b, sy_b = pl.pallas_call(
        kernel,
        out_shape=out_shapes,
        grid_spec=pltpu.PrefetchScalarGridSpec(
            num_scalar_prefetch=0,
            grid=(b, n_tiles),
            in_specs=[
                pl.BlockSpec((1, c, tile), lambda bi, i: (bi, 0, i)),
                pl.BlockSpec((1, 1, tile), lambda bi, i: (bi, 0, i)),
            ],
            out_specs=[
                pl.BlockSpec((1, c, 1), lambda bi, i: (bi, 0, 0)),
                pl.BlockSpec((1, c, 1), lambda bi, i: (bi, 0, 0)),
                pl.BlockSpec((1, c, 1), lambda bi, i: (bi, 0, 0)),
            ],
        ),
        compiler_params=pltpu.CompilerParams(
            # batch axis feeds distinct output blocks -> safe to parallelize
            # (uses both TensorCores on v7x); pixel-tile axis is the reduction.
            dimension_semantics=("parallel", "arbitrary")),
    )(x3, labels3)

    # sum the per-batch partials (tiny (B, C) arrays)
    tp = jnp.sum(tp_b[:, :, 0], axis=0)
    sp = jnp.sum(sp_b[:, :, 0], axis=0)
    sy = jnp.sum(sy_b[:, :, 0], axis=0)
    return tp, sp, sy


@functools.partial(jax.jit, static_argnames=("do_bg",))
def soft_dice_loss(x, y, do_bg=False, smooth=1e-5):
    """SoftDiceLoss.forward.

    x: (B, C, H, W) logits (NCHW, native dtype - f32 or bf16).
    y: (B, H, W) or (B, 1, H, W) integer label map, or (B, C, H, W) hard
       one-hot encoding.
    """
    b, c, h, w = x.shape
    hw = h * w

    # Ground-truth label map (B, HW).
    if y.ndim == x.ndim and y.shape[1] == c and c > 1:
        # TODO(synk): soft (non-hard) one-hot ground truth not supported;
        # hard one-hot is recovered exactly by argmax.
        labels = jnp.argmax(y, axis=1)
    elif y.ndim == x.ndim:                 # (B, 1, H, W)
        labels = y[:, 0]
    else:                                  # (B, H, W)
        labels = y
    labels = labels.reshape(b, 1, hw).astype(jnp.int32)

    # No transpose: (B, C, H, W) -> (B, C, HW) is a free reshape.
    x3 = x.reshape(b, c, hw)

    # Pad pixel axis to a multiple of the lane tile; padded labels get the
    # out-of-range class `c` so they never match a channel, and the kernel
    # additionally masks padded softmax probabilities.
    tile = _choose_tile_hw(hw, c, x3.dtype.itemsize)
    n_tiles = -(-hw // tile)
    hw_pad = n_tiles * tile
    if hw_pad != hw:
        x3 = jnp.pad(x3, ((0, 0), (0, 0), (0, hw_pad - hw)))
        labels = jnp.pad(labels, ((0, 0), (0, 0), (0, hw_pad - hw)),
                         constant_values=c)

    tp, sum_p, sum_y = _dice_stats(x3, labels, hw)
    fp = sum_p - tp
    fn = sum_y - tp

    nominator = 2.0 * tp + smooth
    denominator = 2.0 * tp + fp + fn + smooth
    dc = nominator / (denominator + 1e-8)
    if not do_bg:
        dc = dc[1:]
    return 1.0 - jnp.mean(dc)
    # TODO(synk): loss_mask support omitted (reference default is None).


def _reference_soft_dice(x, y, do_bg=False, smooth=1e-5):
    """Pure-JAX reference mirroring the PyTorch module, for sanity checking."""
    b, c, h, w = x.shape
    p = jax.nn.softmax(x.astype(jnp.float32), axis=1)
    y_onehot = jax.nn.one_hot(y.astype(jnp.int32), c, axis=1, dtype=jnp.float32)
    axes = (0, 2, 3)
    tp = jnp.sum(p * y_onehot, axis=axes)
    fp = jnp.sum(p * (1 - y_onehot), axis=axes)
    fn = jnp.sum((1 - p) * y_onehot, axis=axes)
    dc = (2 * tp + smooth) / (2 * tp + fp + fn + smooth + 1e-8)
    if not do_bg:
        dc = dc[1:]
    return 1.0 - jnp.mean(dc)


if __name__ == "__main__":
    key = jax.random.PRNGKey(0)
    k1, k2, k3, k4 = jax.random.split(key, 4)

    # Case 1: lane-aligned spatial size.
    B, C, H, W = 2, 4, 16, 16
    x = jax.random.normal(k1, (B, C, H, W), dtype=jnp.float32)
    y = jax.random.randint(k2, (B, H, W), 0, C, dtype=jnp.int32)  # label map
    loss = jax.block_until_ready(soft_dice_loss(x, y))
    ref = _reference_soft_dice(x, y)
    assert jnp.allclose(loss, ref, atol=1e-4, rtol=1e-4), (loss, ref)

    # Case 2: ragged spatial size (exercises the in-kernel tail masking path).
    B2, C2, H2, W2 = 2, 4, 13, 13
    x2 = jax.random.normal(k3, (B2, C2, H2, W2), dtype=jnp.float32)
    y2 = jax.random.randint(k4, (B2, H2, W2), 0, C2, dtype=jnp.int32)
    loss2 = jax.block_until_ready(soft_dice_loss(x2, y2))
    ref2 = _reference_soft_dice(x2, y2)
    assert jnp.allclose(loss2, ref2, atol=1e-4, rtol=1e-4), (loss2, ref2)

    print("KERNEL_OK")
</pallas_src>

<mosaic_0001>
module attributes {stable_mosaic.version = 11 : i64} {
  func.func @_dice_stats_kernel(%arg0: i32, %arg1: i32, %arg2: memref<1x4x256xf32, #tpu.memory_space<vmem>>, %arg3: memref<1x1x256xi32, #tpu.memory_space<vmem>>, %arg4: memref<1x4x1xf32, #tpu.memory_space<vmem>>, %arg5: memref<1x4x1xf32, #tpu.memory_space<vmem>>, %arg6: memref<1x4x1xf32, #tpu.memory_space<vmem>>) attributes {dimension_semantics = [#tpu.dimension_semantics<parallel>, #tpu.dimension_semantics<arbitrary>], iteration_bounds = array<i64: 2, 1>, scalar_prefetch = 0 : i64, scratch_operands = 0 : i64, tpu.core_type = #tpu.core_type<tc>, window_params = [{transform_indices = @transform_0, window_bounds = array<i64: 1, 4, 256>}, {transform_indices = @transform_1, window_bounds = array<i64: 1, 1, 256>}, {transform_indices = @transform_2, window_bounds = array<i64: 1, 4, 1>}, {transform_indices = @transform_3, window_bounds = array<i64: 1, 4, 1>}, {transform_indices = @transform_4, window_bounds = array<i64: 1, 4, 1>}]} {
    %c0_i32 = arith.constant 0 : i32
    %0 = arith.cmpi eq, %arg1, %c0_i32 : i32
    %1 = arith.extui %0 : i1 to i32
    %c0_i32_0 = arith.constant 0 : i32
    %2 = arith.cmpi ne, %1, %c0_i32_0 : i32
    scf.if %2 {
      %cst_29 = arith.constant 0.000000e+00 : f32
      %40 = vector.broadcast %cst_29 : f32 to vector<1x4x1xf32>
      %c0_30 = arith.constant 0 : index
      %c0_31 = arith.constant 0 : index
      %c0_32 = arith.constant 0 : index
      %41 = vector.load %arg4[%c0_30, %c0_31, %c0_32] : memref<1x4x1xf32, #tpu.memory_space<vmem>>, vector<1x4x1xf32>
      tpu.vector_store %arg4[%c0_30, %c0_31, %c0_32], %40 {strides = array<i32>} : memref<1x4x1xf32, #tpu.memory_space<vmem>>, vector<1x4x1xf32>,
      %cst_33 = arith.constant 0.000000e+00 : f32
      %42 = vector.broadcast %cst_33 : f32 to vector<1x4x1xf32>
      %c0_34 = arith.constant 0 : index
      %c0_35 = arith.constant 0 : index
      %c0_36 = arith.constant 0 : index
      %43 = vector.load %arg5[%c0_34, %c0_35, %c0_36] : memref<1x4x1xf32, #tpu.memory_space<vmem>>, vector<1x4x1xf32>
      tpu.vector_store %arg5[%c0_34, %c0_35, %c0_36], %42 {strides = array<i32>} : memref<1x4x1xf32, #tpu.memory_space<vmem>>, vector<1x4x1xf32>,
      %cst_37 = arith.constant 0.000000e+00 : f32
      %44 = vector.broadcast %cst_37 : f32 to vector<1x4x1xf32>
      %c0_38 = arith.constant 0 : index
      %c0_39 = arith.constant 0 : index
      %c0_40 = arith.constant 0 : index
      %45 = vector.load %arg6[%c0_38, %c0_39, %c0_40] : memref<1x4x1xf32, #tpu.memory_space<vmem>>, vector<1x4x1xf32>
      tpu.vector_store %arg6[%c0_38, %c0_39, %c0_40], %44 {strides = array<i32>} : memref<1x4x1xf32, #tpu.memory_space<vmem>>, vector<1x4x1xf32>,
    } else {
    }
    %c0 = arith.constant 0 : index
    %c0_1 = arith.constant 0 : index
    %c0_2 = arith.constant 0 : index
    %3 = vector.load %arg2[%c0, %c0_1, %c0_2] : memref<1x4x256xf32, #tpu.memory_space<vmem>>, vector<1x4x256xf32>
    %c0_3 = arith.constant 0 : index
    %c0_4 = arith.constant 0 : index
    %c0_5 = arith.constant 0 : index
    %4 = vector.load %arg3[%c0_3, %c0_4, %c0_5] : memref<1x1x256xi32, #tpu.memory_space<vmem>>, vector<1x1x256xi32>
    %cst = arith.constant dense<0xFF800000> : vector<1x256xf32>
    %5 = vector.multi_reduction <maximumf>, %3, %cst [1] : vector<1x4x256xf32> to vector<1x256xf32>
    %6 = vector.shape_cast %5 : vector<1x256xf32> to vector<1x1x256xf32>
    %7 = vector.broadcast %6 : vector<1x1x256xf32> to vector<1x4x256xf32>
    %8 = arith.subf %3, %7 : vector<1x4x256xf32>
    %9 = math.exp %8 : vector<1x4x256xf32>
    %cst_6 = arith.constant dense<0.000000e+00> : vector<1x256xf32>
    %10 = vector.multi_reduction <add>, %9, %cst_6 [1] : vector<1x4x256xf32> to vector<1x256xf32>
    %11 = vector.shape_cast %10 : vector<1x256xf32> to vector<1x1x256xf32>
    %12 = tpu.reciprocal %11 {approx = true} : vector<1x1x256xf32> -> vector<1x1x256xf32>
    %13 = arith.mulf %11, %12 : vector<1x1x256xf32>
    %cst_7 = arith.constant 2.000000e+00 : f32
    %14 = vector.broadcast %cst_7 : f32 to vector<1x1x256xf32>
    %15 = arith.subf %14, %13 : vector<1x1x256xf32>
    %16 = arith.mulf %12, %15 : vector<1x1x256xf32>
    %17 = vector.broadcast %16 : vector<1x1x256xf32> to vector<1x4x256xf32>
    %18 = arith.mulf %9, %17 : vector<1x4x256xf32>
    %19 = tpu.iota {dimensions = array<i32: 1>} : vector<1x4x256xi32>
    %20 = vector.broadcast %4 : vector<1x1x256xi32> to vector<1x4x256xi32>
    %21 = arith.cmpi eq, %19, %20 : vector<1x4x256xi32>
    %22 = arith.extui %21 : vector<1x4x256xi1> to vector<1x4x256xi32>
    %23 = arith.sitofp %22 : vector<1x4x256xi32> to vector<1x4x256xf32>
    %c0_8 = arith.constant 0 : index
    %c0_9 = arith.constant 0 : index
    %c0_10 = arith.constant 0 : index
    %24 = vector.load %arg4[%c0_8, %c0_9, %c0_10] : memref<1x4x1xf32, #tpu.memory_space<vmem>>, vector<1x4x1xf32>
    %25 = arith.mulf %18, %23 : vector<1x4x256xf32>
    %cst_11 = arith.constant dense<0.000000e+00> : vector<1x4xf32>
    %26 = vector.multi_reduction <add>, %25, %cst_11 [2] : vector<1x4x256xf32> to vector<1x4xf32>
    %27 = vector.shape_cast %26 : vector<1x4xf32> to vector<1x4x1xf32>
    %28 = arith.addf %24, %27 : vector<1x4x1xf32>
    %c0_12 = arith.constant 0 : index
    %c0_13 = arith.constant 0 : index
    %c0_14 = arith.constant 0 : index
    %29 = vector.load %arg4[%c0_12, %c0_13, %c0_14] : memref<1x4x1xf32, #tpu.memory_space<vmem>>, vector<1x4x1xf32>
    tpu.vector_store %arg4[%c0_12, %c0_13, %c0_14], %28 {strides = array<i32>} : memref<1x4x1xf32, #tpu.memory_space<vmem>>, vector<1x4x1xf32>,
    %c0_15 = arith.constant 0 : index
    %c0_16 = arith.constant 0 : index
    %c0_17 = arith.constant 0 : index
    %30 = vector.load %arg5[%c0_15, %c0_16, %c0_17] : memref<1x4x1xf32, #tpu.memory_space<vmem>>, vector<1x4x1xf32>
    %cst_18 = arith.constant dense<0.000000e+00> : vector<1x4xf32>
    %31 = vector.multi_reduction <add>, %18, %cst_18 [2] : vector<1x4x256xf32> to vector<1x4xf32>
    %32 = vector.shape_cast %31 : vector<1x4xf32> to vector<1x4x1xf32>
    %33 = arith.addf %30, %32 : vector<1x4x1xf32>
    %c0_19 = arith.constant 0 : index
    %c0_20 = arith.constant 0 : index
    %c0_21 = arith.constant 0 : index
    %34 = vector.load %arg5[%c0_19, %c0_20, %c0_21] : memref<1x4x1xf32, #tpu.memory_space<vmem>>, vector<1x4x1xf32>
    tpu.vector_store %arg5[%c0_19, %c0_20, %c0_21], %33 {strides = array<i32>} : memref<1x4x1xf32, #tpu.memory_space<vmem>>, vector<1x4x1xf32>,
    %c0_22 = arith.constant 0 : index
    %c0_23 = arith.constant 0 : index
    %c0_24 = arith.constant 0 : index
    %35 = vector.load %arg6[%c0_22, %c0_23, %c0_24] : memref<1x4x1xf32, #tpu.memory_space<vmem>>, vector<1x4x1xf32>
    %cst_25 = arith.constant dense<0.000000e+00> : vector<1x4xf32>
    %36 = vector.multi_reduction <add>, %23, %cst_25 [2] : vector<1x4x256xf32> to vector<1x4xf32>
    %37 = vector.shape_cast %36 : vector<1x4xf32> to vector<1x4x1xf32>
    %38 = arith.addf %35, %37 : vector<1x4x1xf32>
    %c0_26 = arith.constant 0 : index
    %c0_27 = arith.constant 0 : index
    %c0_28 = arith.constant 0 : index
    %39 = vector.load %arg6[%c0_26, %c0_27, %c0_28] : memref<1x4x1xf32, #tpu.memory_space<vmem>>, vector<1x4x1xf32>
    tpu.vector_store %arg6[%c0_26, %c0_27, %c0_28], %38 {strides = array<i32>} : memref<1x4x1xf32, #tpu.memory_space<vmem>>, vector<1x4x1xf32>,
    return
  }
  func.func @transform_0(%arg0: i32, %arg1: i32) -> (i32, i32, i32) {
    %c0_i32 = arith.constant 0 : i32
    %c0_i32_0 = arith.constant 0 : i32
    return %arg0, %c0_i32, %arg1 : i32, i32, i32
  }
  func.func @transform_1(%arg0: i32, %arg1: i32) -> (i32, i32, i32) {
    %c0_i32 = arith.constant 0 : i32
    %c0_i32_0 = arith.constant 0 : i32
    return %arg0, %c0_i32, %arg1 : i32, i32, i32
  }
  func.func @transform_2(%arg0: i32, %arg1: i32) -> (i32, i32, i32) {
    %c0_i32 = arith.constant 0 : i32
    %c0_i32_0 = arith.constant 0 : i32
    %c0_i32_1 = arith.constant 0 : i32
    return %arg0, %c0_i32, %c0_i32_0 : i32, i32, i32
  }
  func.func @transform_3(%arg0: i32, %arg1: i32) -> (i32, i32, i32) {
    %c0_i32 = arith.constant 0 : i32
    %c0_i32_0 = arith.constant 0 : i32
    %c0_i32_1 = arith.constant 0 : i32
    return %arg0, %c0_i32, %c0_i32_0 : i32, i32, i32
  }
  func.func @transform_4(%arg0: i32, %arg1: i32) -> (i32, i32, i32) {
    %c0_i32 = arith.constant 0 : i32
    %c0_i32_0 = arith.constant 0 : i32
    %c0_i32_1 = arith.constant 0 : i32
    return %arg0, %c0_i32, %c0_i32_0 : i32, i32, i32
  }
}

</mosaic_0001>

<bundles_post_ra>
// kernel: soft_dice_loss.1
= control target key start
LH: loop header
LB: loop body
LE: loop exit
PB: predicated region body
PF: predicated region fallthrough
CT: control target
= control target key end

     0   :  { %s645_s15 = smov 0   ;;  %s647_s16 = smov 0   ;;  %s716_s0 = inlined_call_operand.vmem [shape: f32[2,4,256], index: 0, kind: input, shape index: {}]   ;;  %s717_s1 = inlined_call_operand.vmem [shape: s32[2,1,256], index: 1, kind: input, shape index: {}]   ;;  %s718_s2 = inlined_call_operand.vmem [shape: f32[2,4,1], index: 2, kind: output, shape index: {0}]   ;;  %s719_s3 = inlined_call_operand.vmem [shape: f32[2,4,1], index: 3, kind: output, shape index: {1}]   ;;  %s720_s4 = inlined_call_operand.vmem [shape: f32[2,4,1], index: 4, kind: output, shape index: {2}]  }
   0x1   :  { %s649_s17 = smov 0  }
   0x2 LB: > { %s27_s18 = sadd.s32 1, %s613_s16  ;;  %p552_p0 = scmp.ge.s32.totalorder %s617_s17, 1  ;;  %s617_s17 = sphi %s649_s17, %s15_s17   ;;  %s613_s16 = sphi %s647_s16, %s722_s16   ;;  %s609_s15 = sphi %s645_s15, %s721_s15  }
   0x3   : > { %p29_p1 = scmp.ge.s32.totalorder %s27_s18, 2  ;;  %p202_p2 = scmp.lt.s32.totalorder %s617_s17, 3 }
   0x5   : > { %s724_s18 = smov (%p29_p1, %s27_s18), 0  ;;  %p203_p3 = pnand %p552_p0, %p202_p2 }
   0x6   : > { %p248_p4 = scmp.lt.s32.totalorder (!%p203_p3), %s609_s15, 1 }
   0x7   : > { %206 = sbr.rel (%p203_p3) target bundleno = 231 (0xe7), region = 28 }
   0xc   : > { %s726_s15 = smov (!%p248_p4, %s609_s15), 1  ;;  %vm294_vm0 = vcmask 1043456   ;;  %v351_v26 = vlaneseq  ;;  %v619_v43 = vmov 0.0   ;;  %vm282_vm3 = vcmask 3072  }
   0xd   : > { %s563_s19 = sshll.u32 %s726_s15, 3  ;;  %s555_s23 = sshll.u32 %s726_s15, 1 }
   0xe   : > { %s255_s22 = scalar_lea.vmem %s716_s0, %s563_s19  ;;  %s264_s26 = scalar_lea.vmem %s717_s1, %s555_s23  ;;  %v352_v32 = vshrl.u32 %v351_v26, 7 }
   0xf   : > { %v286_v0 = vld [vmem:[%s255_s22] sm:$0xff]  ;;  %s556_s27 = sshll.u32 %s726_s15, 2 }
  0x10   : > { %289 = vst [vmem:[#allocation1] ss:$2 sm:$0xff] %v286_v0  ;;  %v287_v29 = vld [vmem:[%s264_s26] sm:$0x3]  ;;  %s684_s30 = scalar_lea.vmem %s718_s2, %s556_s27  ;;  %s277_s7 = scalar_lea.vmem %s720_s4, %s556_s27 }
  0x11   : > { %v353_v35 = vperm.slane %v287_v29, 0  ;;  %v354_v36 = vperm.slane %v287_v29, 1  ;;  %283 = vst.msk [vmem:[%s684_s30] sm:$0xf] %vm282_vm3, %v619_v43  ;;  %s273_s10 = scalar_lea.vmem %s719_s3, %s556_s27 }
  0x12   : > { %285 = vst.msk [vmem:[%s277_s7] sm:$0xf] %vm282_vm3, %v619_v43 }
  0x13   : > { %vm355_vm1 = vcmp.eq.s32.totalorder %v352_v32, %v353_v35  ;;  %vm356_vm2 = vcmp.eq.s32.totalorder %v352_v32, %v354_v36  ;;  %284 = vst.msk [vmem:[%s273_s10] sm:$0xf] %vm282_vm3, %v619_v43 }
  0x14   : > { %v559_v44 = vsel %vm355_vm1, 1.0, %v619_v43  ;;  %v560_v45 = vsel %vm356_vm2, 1.0, %v619_v43 }
  0x15   : > { %v397_v46 = vsel %vm294_vm0, %v559_v44, 0.0  ;;  %v398_v47 = vsel %vm294_vm0, %v560_v45, 0.0  ;;  %v364_v57 = vrot.slane %v560_v45, 4 }
  0x16   : > { %v399_v48 = vadd.f32 %v398_v47, %v397_v46 }
  0x17   : > { %v290_v1 = vld.sshfl [vmem:[#allocation1] sm:$0xff pattern:$0x75316420]  ;;  %v291_v2 = vld.sshfl [vmem:[#allocation1 + $0x8] sm:$0xff pattern:$0x75316420]  ;;  %v365_v60 = vsel %vm294_vm0, %v559_v44, %v364_v57 }
  0x18   : > { %v295_v3 = vsel %vm294_vm0, %v290_v1, -inf  ;;  %v302_v4 = vsel %vm294_vm0, %v291_v2, -inf  ;;  %400 = vadd.xlane.f32.xlu1 %v399_v48 }
  0x19   : > { %v296_v5 = vrot.slane %v295_v3, 4  ;;  %v303_v6 = vrot.slane %v302_v4, 4 }
  0x1b   : > { %v297_v7 = vmax.f32 %v295_v3, %v296_v5  ;;  %v304_v8 = vmax.f32 %v302_v4, %v303_v6 }
  0x1d   : > { %v298_v9 = vrot.slane %v297_v7, 2  ;;  %v305_v10 = vrot.slane %v304_v8, 2 }
  0x1f   : > { %v299_v11 = vmax.f32 %v297_v7, %v298_v9  ;;  %v306_v12 = vmax.f32 %v304_v8, %v305_v10  ;;  %v396_v9 = vld [vmem:[%s277_s7] sm:$0xf] }
  0x21   : > { %v300_v13 = vrot.slane %v299_v11, 1  ;;  %v307_v14 = vrot.slane %v306_v12, 1 }
  0x23   : > { %v301_v15 = vmax.f32 %v299_v11, %v300_v13  ;;  %v308_v16 = vmax.f32 %v306_v12, %v307_v14  ;;  %v361_v12 = vld [vmem:[%s684_s30] sm:$0xf] }
  0x25   : > { %v311_v17 = vrot.slane %v308_v16, 4 }
  0x27   : > { %v312_v18 = vsel %vm294_vm0, %v301_v15, %v311_v17  ;;  %v382_v15 = vld [vmem:[%s273_s10] sm:$0xf] }
  0x28   : > { %v314_v19 = vsub.f32 %v286_v0, %v312_v18 }
  0x2a   : > { %v315_v20 = vmul.f32 1.442695, %v314_v19 }
  0x2c   : > { %589 = vpow2.f32 %v315_v20 }
  0x32   : > { %v590_v21 = vpop.eup %589 }
  0x33   : > { %318 = vst [vmem:[#allocation1] ss:$2 sm:$0xff] %v590_v21 }
  0x3a   : > { %v319_v22 = vld.sshfl [vmem:[#allocation1] sm:$0xff pattern:$0x75316420]  ;;  %v320_v23 = vld.sshfl [vmem:[#allocation1 + $0x8] sm:$0xff pattern:$0x75316420] }
  0x3b   : > { %v323_v24 = vsel %vm294_vm0, %v319_v22, 0.0  ;;  %v330_v25 = vsel %vm294_vm0, %v320_v23, 0.0 }
  0x3c   : > { %v324_v27 = vrot.slane %v323_v24, 4  ;;  %v331_v28 = vrot.slane %v330_v25, 4 }
  0x3e   : > { %v325_v30 = vadd.f32 %v324_v27, %v323_v24  ;;  %v332_v31 = vadd.f32 %v331_v28, %v330_v25 }
  0x40   : > { %v326_v33 = vrot.slane %v325_v30, 2  ;;  %v333_v34 = vrot.slane %v332_v31, 2 }
  0x42   : > { %v327_v37 = vadd.f32 %v326_v33, %v325_v30  ;;  %v334_v38 = vadd.f32 %v333_v34, %v332_v31 }
  0x44   : > { %v328_v39 = vrot.slane %v327_v37, 1  ;;  %v335_v40 = vrot.slane %v334_v38, 1 }
  0x46   : > { %v329_v41 = vadd.f32 %v328_v39, %v327_v37  ;;  %v336_v42 = vadd.f32 %v335_v40, %v334_v38 }
  0x48   : > { %591 = vrcp.f32 %v329_v41 }
  0x49   : > { %593 = vrcp.f32 %v336_v42 }
  0x4e   : > { %v592_v49 = vpop.eup %591 }
  0x4f   : > { %v594_v50 = vpop.eup %593  ;;  %v339_v51 = vmul.f32 %v592_v49, %v329_v41 }
  0x50   : > { %v340_v52 = vmul.f32 %v594_v50, %v336_v42 }
  0x51   : > { %v341_v53 = vsub.f32 2.0, %v339_v51 }
  0x52   : > { %v342_v54 = vsub.f32 2.0, %v340_v52 }
  0x53   : > { %v343_v55 = vmul.f32 %v592_v49, %v341_v53 }
  0x54   : > { %v344_v56 = vmul.f32 %v594_v50, %v342_v54 }
  0x56   : > { %v347_v58 = vrot.slane %v344_v56, 4 }
  0x58   : > { %v348_v59 = vsel %vm294_vm0, %v343_v55, %v347_v58 }
  0x59   : > { %v350_v61 = vmul.f32 %v590_v21, %v348_v59 }
  0x5b   : > { %v367_v62 = vmul.f32 %v365_v60, %v350_v61 }
  0x5d   : > { %369 = vst [vmem:[#allocation1] ss:$2 sm:$0xff] %v367_v62 }
  0x64   : > { %v370_v63 = vld.sshfl [vmem:[#allocation1] sm:$0xff pattern:$0x75316420]  ;;  %v371_v0 = vld.sshfl [vmem:[#allocation1 + $0x8] sm:$0xff pattern:$0x75316420] }
  0x65   : > { %v374_v1 = vsel %vm294_vm0, %v370_v63, 0.0  ;;  %v375_v2 = vsel %vm294_vm0, %v371_v0, 0.0  ;;  %384 = vst [vmem:[#allocation1] ss:$2 sm:$0xff] %v350_v61 }
  0x66   : > { %v376_v3 = vadd.f32 %v375_v2, %v374_v1 }
  0x68   : > { %377 = vadd.xlane.f32.xlu0 %v376_v3 }
  0x6c   : > { %v385_v4 = vld.sshfl [vmem:[#allocation1] sm:$0xff pattern:$0x75316420]  ;;  %v386_v5 = vld.sshfl [vmem:[#allocation1 + $0x8] sm:$0xff pattern:$0x75316420] }
  0x6d   : > { %v389_v6 = vsel %vm294_vm0, %v385_v4, 0.0  ;;  %v390_v7 = vsel %vm294_vm0, %v386_v5, 0.0 }
  0x6e   : > { %v391_v8 = vadd.f32 %v390_v7, %v389_v6 }
  0x70   : > { %392 = vadd.xlane.f32.xlu0 %v391_v8 }
  0x8b   : > { %v401_v10 = vpop.xlane.xlu1 %400 }
  0x8c   : > { %v402_v11 = vadd.f32 %v401_v10, %v396_v9 }
  0x8e   : > { %403 = vst.msk [vmem:[%s277_s7] sm:$0xf] %vm282_vm3, %v402_v11 }
  0xdb   : > { %v378_v13 = vpop.xlane.xlu0 %377 }
  0xdc   : > { %v379_v14 = vadd.f32 %v378_v13, %v361_v12 }
  0xde   : > { %381 = vst.msk [vmem:[%s684_s30] sm:$0xf] %vm282_vm3, %v379_v14 }
  0xe3   : > { %v393_v16 = vpop.xlane.xlu0 %392 }
  0xe4   : > { %v394_v17 = vadd.f32 %v393_v16, %v382_v15 }
  0xe6   : > { %395 = vst.msk [vmem:[%s273_s10] sm:$0xf] %vm282_vm3, %v394_v17 }
  0xe7 PF: > { %s15_s17 = sadd.s32 1, %s617_s17   ;;  %s721_s15 = smov %s613_s16 }
  0xe8   : > { %p12_p5 = scmp.ge.s32.totalorder %s15_s17, 4   ;;  %s722_s16 = smov %s724_s18 }
  0xea   :  { %14 = sbr.rel (!%p12_p5) target bundleno = 2 (0x2), region = 89 }

</bundles_post_ra>
